<compile_context>
chip_gen: v7x
topology: tpu7x:2x2x1
jax: 0.10.0
libtpu: 0.0.40
codegen_flags: <defaults>
</compile_context>

<pallas_src>
import jax
import jax.numpy as jnp
from jax.experimental import pallas as pl
from jax.experimental.pallas import tpu as pltpu


def lstm_kernel(x_ref, wih_ref, whh_ref, b_ref, wfc_ref, bfc_ref,
                out_ref, xw_sc):
    Bp = out_ref.shape[0]                 # padded batch (sublane multiple)
    H = whh_ref.shape[0]                  # hidden size
    T = x_ref.shape[0] // Bp              # timesteps (x is [T*Bp, E])

    # ---- Phase 1: hoisted input projection (parallel over all timesteps) ---
    # XW = x @ W_ih + (b_ih + b_hh), one big MXU matmul, bias added once.
    xw_sc[...] = (jnp.dot(x_ref[...], wih_ref[...],
                          preferred_element_type=jnp.float32)
                  + b_ref[...])

    # ---- Phase 2: serial recurrence (only h_prev @ W_hh on the MXU) --------
    w_hh = whh_ref[...]                   # load once; reused every timestep

    # Lane mask selecting the g (cell-candidate) block so nonlinearities are
    # applied to the whole (Bp, 4H) vreg instead of four sub-vreg slices.
    lane = jax.lax.broadcasted_iota(jnp.int32, (Bp, 4 * H), 1)
    g_blk = (lane >= 2 * H) & (lane < 3 * H)

    def step(t, carry):
        h_prev, c_prev = carry
        xw_t = xw_sc[pl.ds(t * Bp, Bp), :]                    # (Bp, 4H)
        gates = (jnp.dot(h_prev, w_hh, preferred_element_type=jnp.float32)
                 + xw_t)
        # PyTorch nn.LSTM gate order: i, f, g, o — sigmoid everywhere except g.
        act = jnp.where(g_blk, jnp.tanh(gates), jax.nn.sigmoid(gates))
        i_g = act[:, 0 * H:1 * H]
        f_g = act[:, 1 * H:2 * H]
        g_g = act[:, 2 * H:3 * H]
        o_g = act[:, 3 * H:4 * H]
        c_new = f_g * c_prev + i_g * g_g
        h_new = o_g * jnp.tanh(c_new)
        return h_new, c_new

    h0 = jnp.zeros((Bp, H), jnp.float32)
    c0 = jnp.zeros((Bp, H), jnp.float32)
    h_last, _ = jax.lax.fori_loop(0, T, step, (h0, c0), unroll=True)

    # ---- Phase 3: final classifier (dropout is identity in eval mode) ------
    logits = (jnp.dot(h_last, wfc_ref[...], preferred_element_type=jnp.float32)
              + bfc_ref[...])
    out_ref[...] = logits.astype(out_ref.dtype)


def lstm_classifier_forward(tokens, emb_matrix, w_ih, w_hh, bias, fc_w, fc_b):
    """tokens: int32 [B, T]; returns logits [B, num_classes]."""
    B, T = tokens.shape
    E = emb_matrix.shape[1]
    H = w_hh.shape[0]
    C = fc_w.shape[1]

    SUB, LANE = 8, 128
    Bp = -(-B // SUB) * SUB               # pad batch to a sublane multiple
    Cp = -(-C // LANE) * LANE             # pad classes to a dense 128-lane store

    # --- JAX glue: time-major embedding gather without a float transpose ----
    # Pad the cheap int32 token matrix (index 0 is a valid row; padded batch
    # rows are dropped below), transpose it, and gather straight into
    # [T*Bp, E] row-major order for the kernel's one-shot projection matmul.
    tokens_p = jnp.pad(tokens, ((0, Bp - B), (0, 0)))
    x_tm = jnp.take(emb_matrix, tokens_p.T.reshape(T * Bp), axis=0)   # [T*Bp, E]

    bias2d = bias.reshape(1, 4 * H)
    fc_w_p = jnp.pad(fc_w, ((0, 0), (0, Cp - C)))
    fc_b_p = jnp.pad(fc_b.reshape(1, C), ((0, 0), (0, Cp - C)))

    vmem = pl.BlockSpec(memory_space=pltpu.MemorySpace.VMEM)

    out = pl.pallas_call(
        lstm_kernel,
        out_shape=jax.ShapeDtypeStruct((Bp, Cp), jnp.float32),
        in_specs=[vmem] * 6,              # everything resident in VMEM (tiny)
        out_specs=vmem,
        scratch_shapes=[pltpu.VMEM((T * Bp, 4 * H), jnp.float32)],   # XW
        # TODO(synk): at realistic E/H, store weights in bf16, chunk XW over T,
        # set pltpu.CompilerParams(vmem_limit_bytes=...) for v7x's 64 MiB VMEM,
        # and split large batches across the two v7x TensorCores.
    )(x_tm, w_ih, w_hh, bias2d, fc_w_p, fc_b_p)
    return out[:B, :C]


def lstm_ref(tokens, emb_matrix, w_ih, w_hh, bias, fc_w, fc_b):
    """Pure-JAX reference matching nn.Embedding -> nn.LSTM -> last step -> fc."""
    x = jnp.take(emb_matrix, tokens, axis=0)          # [B, T, E]
    B = x.shape[0]
    H = w_hh.shape[0]

    def step(carry, x_t):
        h, c = carry
        gates = x_t @ w_ih + h @ w_hh + bias
        i = jax.nn.sigmoid(gates[:, 0 * H:1 * H])
        f = jax.nn.sigmoid(gates[:, 1 * H:2 * H])
        g = jnp.tanh(gates[:, 2 * H:3 * H])
        o = jax.nn.sigmoid(gates[:, 3 * H:4 * H])
        c = f * c + i * g
        h = o * jnp.tanh(c)
        return (h, c), None

    init = (jnp.zeros((B, H), jnp.float32), jnp.zeros((B, H), jnp.float32))
    (h_last, _), _ = jax.lax.scan(step, init, jnp.swapaxes(x, 0, 1))
    return h_last @ fc_w + fc_b


if __name__ == "__main__":
    # Small, deterministic config
    vocab_size = 50
    embedding_dim = 32
    hidden_dim = 32
    num_classes = 4
    B, T = 2, 8

    key = jax.random.PRNGKey(0)
    ks = jax.random.split(key, 8)

    k_scale = 1.0 / jnp.sqrt(hidden_dim)
    emb_matrix = jax.random.normal(ks[0], (vocab_size, embedding_dim), jnp.float32)
    # nn.LSTM weights: weight_ih_l0 [4H, E], weight_hh_l0 [4H, H]; stored transposed.
    w_ih = jax.random.uniform(ks[1], (embedding_dim, 4 * hidden_dim),
                              jnp.float32, -k_scale, k_scale)
    w_hh = jax.random.uniform(ks[2], (hidden_dim, 4 * hidden_dim),
                              jnp.float32, -k_scale, k_scale)
    b_ih = jax.random.uniform(ks[3], (4 * hidden_dim,), jnp.float32, -k_scale, k_scale)
    b_hh = jax.random.uniform(ks[4], (4 * hidden_dim,), jnp.float32, -k_scale, k_scale)
    bias = b_ih + b_hh
    fc_w = jax.random.uniform(ks[5], (hidden_dim, num_classes),
                              jnp.float32, -k_scale, k_scale)
    fc_b = jax.random.uniform(ks[6], (num_classes,), jnp.float32, -k_scale, k_scale)

    tokens = jax.random.randint(ks[7], (B, T), 0, vocab_size, dtype=jnp.int32)

    # TODO(synk): dropout is identity here (eval-mode semantics); training-mode
    # stochastic dropout would need pltpu.prng_* inside the kernel.
    logits = lstm_classifier_forward(tokens, emb_matrix, w_ih, w_hh, bias, fc_w, fc_b)
    jax.block_until_ready(logits)
    assert logits.shape == (B, num_classes)

    ref = lstm_ref(tokens, emb_matrix, w_ih, w_hh, bias, fc_w, fc_b)
    assert jnp.allclose(logits, ref, atol=1e-4, rtol=1e-4), (logits, ref)

    print("KERNEL_OK")
</pallas_src>

<mosaic_0001>
module attributes {stable_mosaic.version = 11 : i64} {
  func.func @lstm_kernel(%arg0: memref<64x32xf32, #tpu.memory_space<vmem>>, %arg1: memref<32x128xf32, #tpu.memory_space<vmem>>, %arg2: memref<32x128xf32, #tpu.memory_space<vmem>>, %arg3: memref<1x128xf32, #tpu.memory_space<vmem>>, %arg4: memref<32x128xf32, #tpu.memory_space<vmem>>, %arg5: memref<1x128xf32, #tpu.memory_space<vmem>>, %arg6: memref<8x128xf32, #tpu.memory_space<vmem>>, %arg7: memref<64x128xf32, #tpu.memory_space<vmem>>) attributes {dimension_semantics = [], scalar_prefetch = 0 : i64, scratch_operands = 1 : i64, tpu.core_type = #tpu.core_type<tc>} {
    %c0 = arith.constant 0 : index
    %c0_0 = arith.constant 0 : index
    %0 = vector.load %arg0[%c0, %c0_0] : memref<64x32xf32, #tpu.memory_space<vmem>>, vector<64x32xf32>
    %c0_1 = arith.constant 0 : index
    %c0_2 = arith.constant 0 : index
    %1 = vector.load %arg1[%c0_1, %c0_2] : memref<32x128xf32, #tpu.memory_space<vmem>>, vector<32x128xf32>
    %cst = arith.constant dense<0.000000e+00> : vector<64x128xf32>
    %2 = tpu.matmul %0, %1, %cst {dimension_numbers = #tpu.dot_dimension_numbers<[1], [0], [0], [1], [0, 0, 1, 1], [], []>} : vector<64x32xf32>, vector<32x128xf32>, vector<64x128xf32> -> vector<64x128xf32>
    %c0_3 = arith.constant 0 : index
    %c0_4 = arith.constant 0 : index
    %3 = vector.load %arg3[%c0_3, %c0_4] : memref<1x128xf32, #tpu.memory_space<vmem>>, vector<1x128xf32>
    %4 = vector.broadcast %3 : vector<1x128xf32> to vector<64x128xf32>
    %5 = arith.addf %2, %4 : vector<64x128xf32>
    %c0_5 = arith.constant 0 : index
    %c0_6 = arith.constant 0 : index
    %6 = vector.load %arg7[%c0_5, %c0_6] : memref<64x128xf32, #tpu.memory_space<vmem>>, vector<64x128xf32>
    tpu.vector_store %arg7[%c0_5, %c0_6], %5 {strides = array<i32>} : memref<64x128xf32, #tpu.memory_space<vmem>>, vector<64x128xf32>,
    %c0_7 = arith.constant 0 : index
    %c0_8 = arith.constant 0 : index
    %7 = vector.load %arg2[%c0_7, %c0_8] : memref<32x128xf32, #tpu.memory_space<vmem>>, vector<32x128xf32>
    %8 = tpu.iota {dimensions = array<i32: 1>} : vector<8x128xi32>
    %c64_i32 = arith.constant 64 : i32
    %9 = vector.broadcast %c64_i32 : i32 to vector<8x128xi32>
    %10 = arith.cmpi sge, %8, %9 : vector<8x128xi32>
    %c96_i32 = arith.constant 96 : i32
    %11 = vector.broadcast %c96_i32 : i32 to vector<8x128xi32>
    %12 = arith.cmpi slt, %8, %11 : vector<8x128xi32>
    %13 = arith.andi %10, %12 : vector<8x128xi1>
    %cst_9 = arith.constant 0.000000e+00 : f32
    %14 = vector.broadcast %cst_9 : f32 to vector<8x32xf32>
    %cst_10 = arith.constant 0.000000e+00 : f32
    %15 = vector.broadcast %cst_10 : f32 to vector<8x32xf32>
    %c0_i32 = arith.constant 0 : i32
    %c8_i32 = arith.constant 8 : i32
    %16 = arith.muli %c0_i32, %c8_i32 : i32
    %17 = arith.index_cast %16 : i32 to index
    %c0_11 = arith.constant 0 : index
    %18 = vector.load %arg7[%17, %c0_11] : memref<64x128xf32, #tpu.memory_space<vmem>>, vector<8x128xf32>
    %cst_12 = arith.constant dense<0.000000e+00> : vector<8x128xf32>
    %19 = tpu.matmul %14, %7, %cst_12 {dimension_numbers = #tpu.dot_dimension_numbers<[1], [0], [0], [1], [0, 0, 1, 1], [], []>} : vector<8x32xf32>, vector<32x128xf32>, vector<8x128xf32> -> vector<8x128xf32>
    %20 = arith.addf %19, %18 : vector<8x128xf32>
    %21 = math.tanh %20 : vector<8x128xf32>
    %22 = arith.negf %20 : vector<8x128xf32>
    %23 = math.exp %22 : vector<8x128xf32>
    %cst_13 = arith.constant 1.000000e+00 : f32
    %24 = vector.broadcast %cst_13 : f32 to vector<8x128xf32>
    %25 = arith.addf %24, %23 : vector<8x128xf32>
    %26 = arith.divf %24, %25 : vector<8x128xf32>
    %27 = arith.select %13, %21, %26 : vector<8x128xi1>, vector<8x128xf32>
    %28 = vector.extract_strided_slice %27 {offsets = [0, 0], sizes = [8, 32], strides = [1, 1]} : vector<8x128xf32> to vector<8x32xf32>
    %29 = vector.extract_strided_slice %27 {offsets = [0, 32], sizes = [8, 32], strides = [1, 1]} : vector<8x128xf32> to vector<8x32xf32>
    %30 = vector.extract_strided_slice %27 {offsets = [0, 64], sizes = [8, 32], strides = [1, 1]} : vector<8x128xf32> to vector<8x32xf32>
    %31 = vector.extract_strided_slice %27 {offsets = [0, 96], sizes = [8, 32], strides = [1, 1]} : vector<8x128xf32> to vector<8x32xf32>
    %32 = arith.mulf %29, %15 : vector<8x32xf32>
    %33 = arith.mulf %28, %30 : vector<8x32xf32>
    %34 = arith.addf %32, %33 : vector<8x32xf32>
    %35 = math.tanh %34 : vector<8x32xf32>
    %36 = arith.mulf %31, %35 : vector<8x32xf32>
    %c1_i32 = arith.constant 1 : i32
    %c8_i32_14 = arith.constant 8 : i32
    %37 = arith.muli %c1_i32, %c8_i32_14 : i32
    %38 = arith.index_cast %37 : i32 to index
    %c0_15 = arith.constant 0 : index
    %39 = vector.load %arg7[%38, %c0_15] : memref<64x128xf32, #tpu.memory_space<vmem>>, vector<8x128xf32>
    %cst_16 = arith.constant dense<0.000000e+00> : vector<8x128xf32>
    %40 = tpu.matmul %36, %7, %cst_16 {dimension_numbers = #tpu.dot_dimension_numbers<[1], [0], [0], [1], [0, 0, 1, 1], [], []>} : vector<8x32xf32>, vector<32x128xf32>, vector<8x128xf32> -> vector<8x128xf32>
    %41 = arith.addf %40, %39 : vector<8x128xf32>
    %42 = math.tanh %41 : vector<8x128xf32>
    %43 = arith.negf %41 : vector<8x128xf32>
    %44 = math.exp %43 : vector<8x128xf32>
    %cst_17 = arith.constant 1.000000e+00 : f32
    %45 = vector.broadcast %cst_17 : f32 to vector<8x128xf32>
    %46 = arith.addf %45, %44 : vector<8x128xf32>
    %47 = arith.divf %45, %46 : vector<8x128xf32>
    %48 = arith.select %13, %42, %47 : vector<8x128xi1>, vector<8x128xf32>
    %49 = vector.extract_strided_slice %48 {offsets = [0, 0], sizes = [8, 32], strides = [1, 1]} : vector<8x128xf32> to vector<8x32xf32>
    %50 = vector.extract_strided_slice %48 {offsets = [0, 32], sizes = [8, 32], strides = [1, 1]} : vector<8x128xf32> to vector<8x32xf32>
    %51 = vector.extract_strided_slice %48 {offsets = [0, 64], sizes = [8, 32], strides = [1, 1]} : vector<8x128xf32> to vector<8x32xf32>
    %52 = vector.extract_strided_slice %48 {offsets = [0, 96], sizes = [8, 32], strides = [1, 1]} : vector<8x128xf32> to vector<8x32xf32>
    %53 = arith.mulf %50, %34 : vector<8x32xf32>
    %54 = arith.mulf %49, %51 : vector<8x32xf32>
    %55 = arith.addf %53, %54 : vector<8x32xf32>
    %56 = math.tanh %55 : vector<8x32xf32>
    %57 = arith.mulf %52, %56 : vector<8x32xf32>
    %c2_i32 = arith.constant 2 : i32
    %c8_i32_18 = arith.constant 8 : i32
    %58 = arith.muli %c2_i32, %c8_i32_18 : i32
    %59 = arith.index_cast %58 : i32 to index
    %c0_19 = arith.constant 0 : index
    %60 = vector.load %arg7[%59, %c0_19] : memref<64x128xf32, #tpu.memory_space<vmem>>, vector<8x128xf32>
    %cst_20 = arith.constant dense<0.000000e+00> : vector<8x128xf32>
    %61 = tpu.matmul %57, %7, %cst_20 {dimension_numbers = #tpu.dot_dimension_numbers<[1], [0], [0], [1], [0, 0, 1, 1], [], []>} : vector<8x32xf32>, vector<32x128xf32>, vector<8x128xf32> -> vector<8x128xf32>
    %62 = arith.addf %61, %60 : vector<8x128xf32>
    %63 = math.tanh %62 : vector<8x128xf32>
    %64 = arith.negf %62 : vector<8x128xf32>
    %65 = math.exp %64 : vector<8x128xf32>
    %cst_21 = arith.constant 1.000000e+00 : f32
    %66 = vector.broadcast %cst_21 : f32 to vector<8x128xf32>
    %67 = arith.addf %66, %65 : vector<8x128xf32>
    %68 = arith.divf %66, %67 : vector<8x128xf32>
    %69 = arith.select %13, %63, %68 : vector<8x128xi1>, vector<8x128xf32>
    %70 = vector.extract_strided_slice %69 {offsets = [0, 0], sizes = [8, 32], strides = [1, 1]} : vector<8x128xf32> to vector<8x32xf32>
    %71 = vector.extract_strided_slice %69 {offsets = [0, 32], sizes = [8, 32], strides = [1, 1]} : vector<8x128xf32> to vector<8x32xf32>
    %72 = vector.extract_strided_slice %69 {offsets = [0, 64], sizes = [8, 32], strides = [1, 1]} : vector<8x128xf32> to vector<8x32xf32>
    %73 = vector.extract_strided_slice %69 {offsets = [0, 96], sizes = [8, 32], strides = [1, 1]} : vector<8x128xf32> to vector<8x32xf32>
    %74 = arith.mulf %71, %55 : vector<8x32xf32>
    %75 = arith.mulf %70, %72 : vector<8x32xf32>
    %76 = arith.addf %74, %75 : vector<8x32xf32>
    %77 = math.tanh %76 : vector<8x32xf32>
    %78 = arith.mulf %73, %77 : vector<8x32xf32>
    %c3_i32 = arith.constant 3 : i32
    %c8_i32_22 = arith.constant 8 : i32
    %79 = arith.muli %c3_i32, %c8_i32_22 : i32
    %80 = arith.index_cast %79 : i32 to index
    %c0_23 = arith.constant 0 : index
    %81 = vector.load %arg7[%80, %c0_23] : memref<64x128xf32, #tpu.memory_space<vmem>>, vector<8x128xf32>
    %cst_24 = arith.constant dense<0.000000e+00> : vector<8x128xf32>
    %82 = tpu.matmul %78, %7, %cst_24 {dimension_numbers = #tpu.dot_dimension_numbers<[1], [0], [0], [1], [0, 0, 1, 1], [], []>} : vector<8x32xf32>, vector<32x128xf32>, vector<8x128xf32> -> vector<8x128xf32>
    %83 = arith.addf %82, %81 : vector<8x128xf32>
    %84 = math.tanh %83 : vector<8x128xf32>
    %85 = arith.negf %83 : vector<8x128xf32>
    %86 = math.exp %85 : vector<8x128xf32>
    %cst_25 = arith.constant 1.000000e+00 : f32
    %87 = vector.broadcast %cst_25 : f32 to vector<8x128xf32>
    %88 = arith.addf %87, %86 : vector<8x128xf32>
    %89 = arith.divf %87, %88 : vector<8x128xf32>
    %90 = arith.select %13, %84, %89 : vector<8x128xi1>, vector<8x128xf32>
    %91 = vector.extract_strided_slice %90 {offsets = [0, 0], sizes = [8, 32], strides = [1, 1]} : vector<8x128xf32> to vector<8x32xf32>
    %92 = vector.extract_strided_slice %90 {offsets = [0, 32], sizes = [8, 32], strides = [1, 1]} : vector<8x128xf32> to vector<8x32xf32>
    %93 = vector.extract_strided_slice %90 {offsets = [0, 64], sizes = [8, 32], strides = [1, 1]} : vector<8x128xf32> to vector<8x32xf32>
    %94 = vector.extract_strided_slice %90 {offsets = [0, 96], sizes = [8, 32], strides = [1, 1]} : vector<8x128xf32> to vector<8x32xf32>
    %95 = arith.mulf %92, %76 : vector<8x32xf32>
    %96 = arith.mulf %91, %93 : vector<8x32xf32>
    %97 = arith.addf %95, %96 : vector<8x32xf32>
    %98 = math.tanh %97 : vector<8x32xf32>
    %99 = arith.mulf %94, %98 : vector<8x32xf32>
    %c4_i32 = arith.constant 4 : i32
    %c8_i32_26 = arith.constant 8 : i32
    %100 = arith.muli %c4_i32, %c8_i32_26 : i32
    %101 = arith.index_cast %100 : i32 to index
    %c0_27 = arith.constant 0 : index
    %102 = vector.load %arg7[%101, %c0_27] : memref<64x128xf32, #tpu.memory_space<vmem>>, vector<8x128xf32>
    %cst_28 = arith.constant dense<0.000000e+00> : vector<8x128xf32>
    %103 = tpu.matmul %99, %7, %cst_28 {dimension_numbers = #tpu.dot_dimension_numbers<[1], [0], [0], [1], [0, 0, 1, 1], [], []>} : vector<8x32xf32>, vector<32x128xf32>, vector<8x128xf32> -> vector<8x128xf32>
    %104 = arith.addf %103, %102 : vector<8x128xf32>
    %105 = math.tanh %104 : vector<8x128xf32>
    %106 = arith.negf %104 : vector<8x128xf32>
    %107 = math.exp %106 : vector<8x128xf32>
    %cst_29 = arith.constant 1.000000e+00 : f32
    %108 = vector.broadcast %cst_29 : f32 to vector<8x128xf32>
    %109 = arith.addf %108, %107 : vector<8x128xf32>
    %110 = arith.divf %108, %109 : vector<8x128xf32>
    %111 = arith.select %13, %105, %110 : vector<8x128xi1>, vector<8x128xf32>
    %112 = vector.extract_strided_slice %111 {offsets = [0, 0], sizes = [8, 32], strides = [1, 1]} : vector<8x128xf32> to vector<8x32xf32>
    %113 = vector.extract_strided_slice %111 {offsets = [0, 32], sizes = [8, 32], strides = [1, 1]} : vector<8x128xf32> to vector<8x32xf32>
    %114 = vector.extract_strided_slice %111 {offsets = [0, 64], sizes = [8, 32], strides = [1, 1]} : vector<8x128xf32> to vector<8x32xf32>
    %115 = vector.extract_strided_slice %111 {offsets = [0, 96], sizes = [8, 32], strides = [1, 1]} : vector<8x128xf32> to vector<8x32xf32>
    %116 = arith.mulf %113, %97 : vector<8x32xf32>
    %117 = arith.mulf %112, %114 : vector<8x32xf32>
    %118 = arith.addf %116, %117 : vector<8x32xf32>
    %119 = math.tanh %118 : vector<8x32xf32>
    %120 = arith.mulf %115, %119 : vector<8x32xf32>
    %c5_i32 = arith.constant 5 : i32
    %c8_i32_30 = arith.constant 8 : i32
    %121 = arith.muli %c5_i32, %c8_i32_30 : i32
    %122 = arith.index_cast %121 : i32 to index
    %c0_31 = arith.constant 0 : index
    %123 = vector.load %arg7[%122, %c0_31] : memref<64x128xf32, #tpu.memory_space<vmem>>, vector<8x128xf32>
    %cst_32 = arith.constant dense<0.000000e+00> : vector<8x128xf32>
    %124 = tpu.matmul %120, %7, %cst_32 {dimension_numbers = #tpu.dot_dimension_numbers<[1], [0], [0], [1], [0, 0, 1, 1], [], []>} : vector<8x32xf32>, vector<32x128xf32>, vector<8x128xf32> -> vector<8x128xf32>
    %125 = arith.addf %124, %123 : vector<8x128xf32>
    %126 = math.tanh %125 : vector<8x128xf32>
    %127 = arith.negf %125 : vector<8x128xf32>
    %128 = math.exp %127 : vector<8x128xf32>
    %cst_33 = arith.constant 1.000000e+00 : f32
    %129 = vector.broadcast %cst_33 : f32 to vector<8x128xf32>
    %130 = arith.addf %129, %128 : vector<8x128xf32>
    %131 = arith.divf %129, %130 : vector<8x128xf32>
    %132 = arith.select %13, %126, %131 : vector<8x128xi1>, vector<8x128xf32>
    %133 = vector.extract_strided_slice %132 {offsets = [0, 0], sizes = [8, 32], strides = [1, 1]} : vector<8x128xf32> to vector<8x32xf32>
    %134 = vector.extract_strided_slice %132 {offsets = [0, 32], sizes = [8, 32], strides = [1, 1]} : vector<8x128xf32> to vector<8x32xf32>
    %135 = vector.extract_strided_slice %132 {offsets = [0, 64], sizes = [8, 32], strides = [1, 1]} : vector<8x128xf32> to vector<8x32xf32>
    %136 = vector.extract_strided_slice %132 {offsets = [0, 96], sizes = [8, 32], strides = [1, 1]} : vector<8x128xf32> to vector<8x32xf32>
    %137 = arith.mulf %134, %118 : vector<8x32xf32>
    %138 = arith.mulf %133, %135 : vector<8x32xf32>
    %139 = arith.addf %137, %138 : vector<8x32xf32>
    %140 = math.tanh %139 : vector<8x32xf32>
    %141 = arith.mulf %136, %140 : vector<8x32xf32>
    %c6_i32 = arith.constant 6 : i32
    %c8_i32_34 = arith.constant 8 : i32
    %142 = arith.muli %c6_i32, %c8_i32_34 : i32
    %143 = arith.index_cast %142 : i32 to index
    %c0_35 = arith.constant 0 : index
    %144 = vector.load %arg7[%143, %c0_35] : memref<64x128xf32, #tpu.memory_space<vmem>>, vector<8x128xf32>
    %cst_36 = arith.constant dense<0.000000e+00> : vector<8x128xf32>
    %145 = tpu.matmul %141, %7, %cst_36 {dimension_numbers = #tpu.dot_dimension_numbers<[1], [0], [0], [1], [0, 0, 1, 1], [], []>} : vector<8x32xf32>, vector<32x128xf32>, vector<8x128xf32> -> vector<8x128xf32>
    %146 = arith.addf %145, %144 : vector<8x128xf32>
    %147 = math.tanh %146 : vector<8x128xf32>
    %148 = arith.negf %146 : vector<8x128xf32>
    %149 = math.exp %148 : vector<8x128xf32>
    %cst_37 = arith.constant 1.000000e+00 : f32
    %150 = vector.broadcast %cst_37 : f32 to vector<8x128xf32>
    %151 = arith.addf %150, %149 : vector<8x128xf32>
    %152 = arith.divf %150, %151 : vector<8x128xf32>
    %153 = arith.select %13, %147, %152 : vector<8x128xi1>, vector<8x128xf32>
    %154 = vector.extract_strided_slice %153 {offsets = [0, 0], sizes = [8, 32], strides = [1, 1]} : vector<8x128xf32> to vector<8x32xf32>
    %155 = vector.extract_strided_slice %153 {offsets = [0, 32], sizes = [8, 32], strides = [1, 1]} : vector<8x128xf32> to vector<8x32xf32>
    %156 = vector.extract_strided_slice %153 {offsets = [0, 64], sizes = [8, 32], strides = [1, 1]} : vector<8x128xf32> to vector<8x32xf32>
    %157 = vector.extract_strided_slice %153 {offsets = [0, 96], sizes = [8, 32], strides = [1, 1]} : vector<8x128xf32> to vector<8x32xf32>
    %158 = arith.mulf %155, %139 : vector<8x32xf32>
    %159 = arith.mulf %154, %156 : vector<8x32xf32>
    %160 = arith.addf %158, %159 : vector<8x32xf32>
    %161 = math.tanh %160 : vector<8x32xf32>
    %162 = arith.mulf %157, %161 : vector<8x32xf32>
    %c7_i32 = arith.constant 7 : i32
    %c8_i32_38 = arith.constant 8 : i32
    %163 = arith.muli %c7_i32, %c8_i32_38 : i32
    %164 = arith.index_cast %163 : i32 to index
    %c0_39 = arith.constant 0 : index
    %165 = vector.load %arg7[%164, %c0_39] : memref<64x128xf32, #tpu.memory_space<vmem>>, vector<8x128xf32>
    %cst_40 = arith.constant dense<0.000000e+00> : vector<8x128xf32>
    %166 = tpu.matmul %162, %7, %cst_40 {dimension_numbers = #tpu.dot_dimension_numbers<[1], [0], [0], [1], [0, 0, 1, 1], [], []>} : vector<8x32xf32>, vector<32x128xf32>, vector<8x128xf32> -> vector<8x128xf32>
    %167 = arith.addf %166, %165 : vector<8x128xf32>
    %168 = math.tanh %167 : vector<8x128xf32>
    %169 = arith.negf %167 : vector<8x128xf32>
    %170 = math.exp %169 : vector<8x128xf32>
    %cst_41 = arith.constant 1.000000e+00 : f32
    %171 = vector.broadcast %cst_41 : f32 to vector<8x128xf32>
    %172 = arith.addf %171, %170 : vector<8x128xf32>
    %173 = arith.divf %171, %172 : vector<8x128xf32>
    %174 = arith.select %13, %168, %173 : vector<8x128xi1>, vector<8x128xf32>
    %175 = vector.extract_strided_slice %174 {offsets = [0, 0], sizes = [8, 32], strides = [1, 1]} : vector<8x128xf32> to vector<8x32xf32>
    %176 = vector.extract_strided_slice %174 {offsets = [0, 32], sizes = [8, 32], strides = [1, 1]} : vector<8x128xf32> to vector<8x32xf32>
    %177 = vector.extract_strided_slice %174 {offsets = [0, 64], sizes = [8, 32], strides = [1, 1]} : vector<8x128xf32> to vector<8x32xf32>
    %178 = vector.extract_strided_slice %174 {offsets = [0, 96], sizes = [8, 32], strides = [1, 1]} : vector<8x128xf32> to vector<8x32xf32>
    %179 = arith.mulf %176, %160 : vector<8x32xf32>
    %180 = arith.mulf %175, %177 : vector<8x32xf32>
    %181 = arith.addf %179, %180 : vector<8x32xf32>
    %182 = math.tanh %181 : vector<8x32xf32>
    %183 = arith.mulf %178, %182 : vector<8x32xf32>
    %c8_i32_42 = arith.constant 8 : i32
    %c0_43 = arith.constant 0 : index
    %c0_44 = arith.constant 0 : index
    %184 = vector.load %arg4[%c0_43, %c0_44] : memref<32x128xf32, #tpu.memory_space<vmem>>, vector<32x128xf32>
    %cst_45 = arith.constant dense<0.000000e+00> : vector<8x128xf32>
    %185 = tpu.matmul %183, %184, %cst_45 {dimension_numbers = #tpu.dot_dimension_numbers<[1], [0], [0], [1], [0, 0, 1, 1], [], []>} : vector<8x32xf32>, vector<32x128xf32>, vector<8x128xf32> -> vector<8x128xf32>
    %c0_46 = arith.constant 0 : index
    %c0_47 = arith.constant 0 : index
    %186 = vector.load %arg5[%c0_46, %c0_47] : memref<1x128xf32, #tpu.memory_space<vmem>>, vector<1x128xf32>
    %187 = vector.broadcast %186 : vector<1x128xf32> to vector<8x128xf32>
    %188 = arith.addf %185, %187 : vector<8x128xf32>
    %c0_48 = arith.constant 0 : index
    %c0_49 = arith.constant 0 : index
    %189 = vector.load %arg6[%c0_48, %c0_49] : memref<8x128xf32, #tpu.memory_space<vmem>>, vector<8x128xf32>
    tpu.vector_store %arg6[%c0_48, %c0_49], %188 {strides = array<i32>} : memref<8x128xf32, #tpu.memory_space<vmem>>, vector<8x128xf32>,
    return
  }
}

</mosaic_0001>

<bundles_post_ra>
// kernel: tpu_custom_call.1
= control target key start
LH: loop header
LB: loop body
LE: loop exit
PB: predicated region body
PF: predicated region fallthrough
CT: control target
= control target key end

     0   :  { %vm43_vm0 = vcmask 261120   ;;  %v1455_v4 = vmov 0.0|0.0   ;;  %vm1456_vm1 = vmmov 0   ;;  %v1457_v13 = vmov 0.0   ;;  %s1721_s0 = inlined_call_operand.vmem [shape: f32[64,32], index: 0, kind: input, shape index: {}]   ;;  %s1722_s1 = inlined_call_operand.vmem [shape: f32[32,128], index: 1, kind: input, shape index: {}]   ;;  %s1723_s2 = inlined_call_operand.vmem [shape: f32[32,128], index: 2, kind: input, shape index: {}]   ;;  %s1724_s3 = inlined_call_operand.vmem [shape: f32[1,128], index: 3, kind: input, shape index: {}]   ;;  %s1725_s4 = inlined_call_operand.vmem [shape: f32[32,128], index: 4, kind: input, shape index: {}]   ;;  %s1726_s5 = inlined_call_operand.vmem [shape: f32[1,128], index: 5, kind: input, shape index: {}]   ;;  %s1727_s6 = inlined_call_operand.hbm [shape: f32[8,128], index: 6, kind: output, shape index: {}]  }
   0x1   :  { %v32_v0 = vld [vmem:[%s1722_s1] sm:$0xff]  ;;  %v33_v1 = vld [vmem:[%s1722_s1 + $0x8] sm:$0xff]  ;;  %1307 = vmatprep.subr.bf16.mxu1 %v1455_v4  ;;  %v34_v6 = vld [vmem:[%s1722_s1 + $0x10] sm:$0xff]  ;;  %1208 = vmatprep.mubr.msk.f32.mxu1 %vm1456_vm1, %v1457_v13 }
   0x2   :  { %v181_v2 = vld [vmem:[%s1723_s2] sm:$0xff]  ;;  %v1299_v3 = vpack.c.bf16 %v33_v1, %v32_v0  ;;  %v182_v5 = vld [vmem:[%s1723_s2 + $0x8] sm:$0xff]  ;;  %v35_v7 = vld [vmem:[%s1722_s1 + $0x18] sm:$0xff] }
   0x3   :  { %v1515_v8 = vpack.c.bf16 %v182_v5, %v181_v2  ;;  %v1303_v9 = vpack.c.bf16 %v35_v7, %v34_v6  ;;  %v24_v10 = vld [vmem:[%s1721_s0] sm:$0xff]  ;;  %v183_v11 = vld [vmem:[%s1723_s2 + $0x10] sm:$0xff]  ;;  %v184_v12 = vld [vmem:[%s1723_s2 + $0x18] sm:$0xff] }
   0x4   :  { %1300 = vmatprep.subr.bf16.mxu0 %v1299_v3  ;;  %1188 = vmatprep.mubr.msk.f32.mxu0 %vm43_vm0, %v24_v10 }
   0x5   :  { %11 = vsyncpa [#allocation4], 0  ;;  %1302 = vmatpush3.bf16.msra.mxu0 %v1299_v3  ;;  %1309 = vmatpush3.bf16.msra.mxu1 %v1515_v8  ;;  %v1530_v14 = vpack.c.bf16 %v184_v12, %v183_v11  ;;  %v25_v15 = vld [vmem:[%s1721_s0 + $0x8] sm:$0xff]  ;;  %v1554_v16 = vld [vmem:[%s1724_s3] ss:$0 sm:$0xff]  ;;  %v185_v25 = vlaneseq  ;;  %s1458_s3 = smov 64  }
   0x6   :  { %1304 = vmatprep.subr.bf16.mxu0 %v1303_v9  ;;  %1310 = vmatprep.subr.bf16.mxu1 %v1455_v4  ;;  %s1459_s17 = smov 32   ;;  %v26_v56 = vld [vmem:[%s1721_s0 + $0x10] sm:$0xff]  ;;  %v27_v57 = vld [vmem:[%s1721_s0 + $0x18] sm:$0xff]  ;;  %v28_v58 = vld [vmem:[%s1721_s0 + $0x20] sm:$0xff] }
   0x7   :  { %v186_v27 = vand.u32 127, %v185_v25  ;;  %v29_v59 = vld [vmem:[%s1721_s0 + $0x28] sm:$0xff]  ;;  %v30_v60 = vld [vmem:[%s1721_s0 + $0x30] sm:$0xff]  ;;  %v31_v61 = vld [vmem:[%s1721_s0 + $0x38] sm:$0xff] }
   0x8   :  { %v998_v28 = vld [vmem:[%s1725_s4 + $0x10] sm:$0xff] }
   0x9   :  { %1306 = vmatpush3.bf16.msra.mxu0 %v1303_v9  ;;  %1312 = vmatpush3.bf16.msra.mxu1 %v1530_v14  ;;  %vm187_vm2 = vcmp.ge.s32.totalorder %v186_v27, 64  ;;  %vm188_vm3 = vcmp.lt.s32.totalorder %v186_v27, 96 }
   0xa   :  { %1313 = vmatprep.subr.bf16.mxu1 %v1455_v4  ;;  %1319 = vmatprep.subr.bf16.mxu0 %v1455_v4  ;;  %vm1557_vm4 = vmand %vm187_vm2, %vm188_vm3 }
   0xc   :  { %1189 = vmatmul.mubr.msk.f32.vlgmr.msra.gmra.mrb[0].mxu0 %vm43_vm0, %v25_v15  ;;  %1209 = vmatmul.mubr.f32.vlgmr.msra.gmra.mrb[0].mxu1 %v1457_v13 }
   0xd   :  { %1315 = vmatpush3.bf16.msra.mxu1 %v1515_v8  ;;  %1219 = vmatprep.mubr.msk.f32.mxu1 %vm1456_vm1, %v1457_v13 }
   0xe   :  { %1316 = vmatprep.subr.bf16.mxu1 %v1455_v4  ;;  %1321 = vmatpush3.bf16.msra.mxu0 %v1515_v8 }
   0xf   :  { %1322 = vmatprep.subr.bf16.mxu0 %v1455_v4  ;;  %1191 = vmatprep.mubr.msk.f32.mxu0 %vm43_vm0, %v26_v56 }
  0x10   :  { %1192 = vmatmul.mubr.msk.f32.gmra.mrb[2].mxu0 %vm43_vm0, %v27_v57 }
  0x11   :  { %1318 = vmatpush3.bf16.msra.mxu1 %v1530_v14  ;;  %1194 = vmatprep.mubr.msk.f32.mxu0 %vm43_vm0, %v28_v58 }
  0x12   :  { %1324 = vmatpush3.bf16.msra.mxu0 %v1530_v14  ;;  %1325 = vmatprep.subr.bf16.mxu1 %v1455_v4 }
  0x13   :  { %1331 = vmatprep.subr.bf16.mxu0 %v1455_v4 }
  0x14   :  { %1195 = vmatmul.mubr.msk.f32.gmra.mrb[4].mxu0 %vm43_vm0, %v29_v59 }
  0x15   :  { %1197 = vmatprep.mubr.msk.f32.mxu0 %vm43_vm0, %v30_v60 }
  0x18   :  { %1198 = vmatmul.mubr.msk.f32.gmra.mrb[6].mxu0 %vm43_vm0, %v31_v61 }
  0x19   :  { %1230 = vmatprep.mubr.msk.f32.mxu0 %vm1456_vm1, %v1457_v13 }
  0xdf   :  { %v1190_v17 = vpop.f32.mrb[0].mxu0  ;;  %v260_v18 = vpop.f32.mrb[0].mxu1 }
  0xe0   :  { %v134_v19 = vpop.f32.mrb[1].mxu0  ;;  %v1210_v20 = vpop.f32.mrb[1].mxu1  ;;  %v140_v41 = vadd.f32 %v1190_v17, %v1554_v16 }
  0xe1   :  { %v135_v21 = vadd.f32 %v1554_v16, %v134_v19 }
  0xe3   :  { %v261_v22 = vadd.f32 %v260_v18, %v135_v21  ;;  %v1193_v1 = vpop.f32.mrb[2].mxu0 }
  0xe4   :  { %v144_v2 = vpop.f32.mrb[3].mxu0 }
  0xe5   :  { %v1106_v23 = vmul.f32 -1.442695, %v261_v22  ;;  %v145_v10 = vadd.f32 %v1554_v16, %v144_v2 }
  0xe7   :  { %1367 = vpow2.f32 %v1106_v23  ;;  %v1607_v3 = vpop.f32.mrb[4].mxu0 }
  0xe8   :  { %1369 = vtanh.f32 %v261_v22  ;;  %v1609_v5 = vpop.f32.mrb[5].mxu0 }
  0xeb   :  { %v1611_v6 = vpop.f32.mrb[6].mxu0 }
  0xec   :  { %v1613_v7 = vpop.f32.mrb[7].mxu0 }
  0xf1   :  { %v1368_v24 = vpop.eup %1367 }
  0xf2   :  { %v268_v26 = vadd.f32 1.0, %v1368_v24  ;;  %v1370_v29 = vpop.eup %1369 }
  0xf4   :  { %1371 = vrcp.f32 %v268_v26 }
  0xfe   :  { %v1372_v30 = vpop.eup %1371 }
  0xff   :  { %v271_v31 = vsel %vm1557_vm4, %v1370_v29, %v1372_v30 }
 0x100   :  { %274 = vrot.lane.b32.xlu0 %v271_v31, %s1458_s3  ;;  %v272_v34 = vmul.f32 0.0, %v271_v31 }
 0x172   :  { %v275_v32 = vpop.permute.xlu0 %274 }
 0x173   :  { %v277_v33 = vmul.f32 %v275_v32, %v271_v31 }
 0x175   :  { %279 = vrot.lane.b32.xlu0 %v277_v33, %s1459_s17  ;;  %v150_v33 = vadd.f32 %v1193_v1, %v1554_v16 }
 0x1e7   :  { %v280_v35 = vpop.permute.xlu0 %279 }
 0x1e8   :  { %v282_v36 = vadd.f32 %v280_v35, %v272_v34 }
 0x1ea   :  { %1373 = vtanh.f32 %v282_v36 }
 0x1f4   :  { %v1374_v37 = vpop.eup %1373 }
 0x1f5   :  { %285 = vrot.lane.b32.xlu1 %v1374_v37, %s1458_s3 }
 0x267   :  { %v286_v38 = vpop.permute.xlu1 %285 }
 0x268   :  { %v288_v39 = vmul.f32 %v286_v38, %v271_v31 }
 0x26a   :  { %291 = vrot.lane.b32.xlu1 %v288_v39, %s1459_s17 }
 0x2dc   :  { %v292_v40 = vpop.permute.xlu1 %291 }
 0x2dd   :  { %1220 = vmatmul.mubr.msk.f32.vlgmr.msra.gmra.mrb[2].mxu1 %vm43_vm0, %v292_v40 }
 0x2de   :  { %1327 = vmatpush3.bf16.msra.mxu1 %v1515_v8  ;;  %1241 = vmatprep.mubr.msk.f32.mxu1 %vm1456_vm1, %v1457_v13 }
 0x2df   :  { %1328 = vmatprep.subr.bf16.mxu1 %v1455_v4 }
 0x2e2   :  { %1330 = vmatpush3.bf16.msra.mxu1 %v1530_v14 }
 0x2e3   :  { %1337 = vmatprep.subr.bf16.mxu1 %v1455_v4 }
 0x3b0   :  { %v361_v42 = vpop.f32.mrb[2].mxu1 }
 0x3b1   :  { %v362_v43 = vadd.f32 %v361_v42, %v140_v41  ;;  %v1221_v44 = vpop.f32.mrb[3].mxu1 }
 0x3b3   :  { %v1108_v45 = vmul.f32 -1.442695, %v362_v43 }
 0x3b5   :  { %1375 = vpow2.f32 %v1108_v45 }
 0x3b6   :  { %1377 = vtanh.f32 %v362_v43 }
 0x3bf   :  { %v1376_v46 = vpop.eup %1375 }
 0x3c0   :  { %v369_v47 = vadd.f32 1.0, %v1376_v46  ;;  %v1378_v48 = vpop.eup %1377 }
 0x3c2   :  { %1379 = vrcp.f32 %v369_v47 }
 0x3cc   :  { %v1380_v49 = vpop.eup %1379 }
 0x3cd   :  { %v372_v50 = vsel %vm1557_vm4, %v1378_v48, %v1380_v49 }
 0x3ce   :  { %375 = vrot.lane.b32.xlu0 %v372_v50, %s1458_s3  ;;  %v373_v53 = vmul.f32 %v372_v50, %v282_v36 }
 0x440   :  { %v376_v51 = vpop.permute.xlu0 %375 }
 0x441   :  { %v378_v52 = vmul.f32 %v376_v51, %v372_v50 }
 0x443   :  { %380 = vrot.lane.b32.xlu1 %v378_v52, %s1459_s17  ;;  %v155_v52 = vadd.f32 %v1554_v16, %v1609_v5 }
 0x4b5   :  { %v381_v54 = vpop.permute.xlu1 %380 }
 0x4b6   :  { %v383_v55 = vadd.f32 %v381_v54, %v373_v53 }
 0x4b8   :  { %1381 = vtanh.f32 %v383_v55 }
 0x4c2   :  { %v1382_v62 = vpop.eup %1381 }
 0x4c3   :  { %386 = vrot.lane.b32.xlu0 %v1382_v62, %s1458_s3 }
 0x535   :  { %v387_v63 = vpop.permute.xlu0 %386 }
 0x536   :  { %v389_v0 = vmul.f32 %v387_v63, %v372_v50 }
 0x538   :  { %392 = vrot.lane.b32.xlu1 %v389_v0, %s1459_s17 }
 0x5aa   :  { %v393_v9 = vpop.permute.xlu1 %392 }
 0x5ab   :  { %1231 = vmatmul.mubr.msk.f32.vlgmr.msra.gmra.mrb[8].mxu0 %vm43_vm0, %v393_v9 }
 0x5ac   :  { %1333 = vmatpush3.bf16.msra.mxu0 %v1515_v8  ;;  %1252 = vmatprep.mubr.msk.f32.mxu0 %vm1456_vm1, %v1457_v13 }
 0x5ad   :  { %1334 = vmatprep.subr.bf16.mxu0 %v1455_v4 }
 0x5b0   :  { %1336 = vmatpush3.bf16.msra.mxu0 %v1530_v14 }
 0x5b1   :  { %1343 = vmatprep.subr.bf16.mxu0 %v1455_v4 }
 0x67e   :  { %v462_v11 = vpop.f32.mrb[8].mxu0 }
 0x67f   :  { %v463_v12 = vadd.f32 %v462_v11, %v145_v10  ;;  %v1232_v15 = vpop.f32.mrb[9].mxu0 }
 0x681   :  { %v1110_v17 = vmul.f32 -1.442695, %v463_v12 }
 0x683   :  { %1383 = vpow2.f32 %v1110_v17 }
 0x684   :  { %1385 = vtanh.f32 %v463_v12  ;;  %v160_v12 = vadd.f32 %v1607_v3, %v1554_v16 }
 0x68d   :  { %v1384_v18 = vpop.eup %1383 }
 0x68e   :  { %v470_v19 = vadd.f32 1.0, %v1384_v18  ;;  %v1386_v20 = vpop.eup %1385 }
 0x690   :  { %1387 = vrcp.f32 %v470_v19 }
 0x69a   :  { %v1388_v21 = vpop.eup %1387 }
 0x69b   :  { %v473_v22 = vsel %vm1557_vm4, %v1386_v20, %v1388_v21 }
 0x69c   :  { %476 = vrot.lane.b32.xlu0 %v473_v22, %s1458_s3  ;;  %v474_v25 = vmul.f32 %v473_v22, %v383_v55 }
 0x70e   :  { %v477_v23 = vpop.permute.xlu0 %476 }
 0x70f   :  { %v479_v24 = vmul.f32 %v477_v23, %v473_v22 }
 0x711   :  { %481 = vrot.lane.b32.xlu1 %v479_v24, %s1459_s17 }
 0x783   :  { %v482_v26 = vpop.permute.xlu1 %481 }
 0x784   :  { %v484_v27 = vadd.f32 %v482_v26, %v474_v25 }
 0x786   :  { %1389 = vtanh.f32 %v484_v27 }
 0x790   :  { %v1390_v29 = vpop.eup %1389 }
 0x791   :  { %487 = vrot.lane.b32.xlu0 %v1390_v29, %s1458_s3 }
 0x803   :  { %v488_v30 = vpop.permute.xlu0 %487 }
 0x804   :  { %v490_v31 = vmul.f32 %v488_v30, %v473_v22 }
 0x806   :  { %493 = vrot.lane.b32.xlu1 %v490_v31, %s1459_s17 }
 0x878   :  { %v494_v32 = vpop.permute.xlu1 %493 }
 0x879   :  { %1242 = vmatmul.mubr.msk.f32.vlgmr.msra.gmra.mrb[4].mxu1 %vm43_vm0, %v494_v32  ;;  %v165_v32 = vadd.f32 %v1554_v16, %v1613_v7 }
 0x87a   :  { %1339 = vmatpush3.bf16.msra.mxu1 %v1515_v8  ;;  %1263 = vmatprep.mubr.msk.f32.mxu1 %vm1456_vm1, %v1457_v13 }
 0x87b   :  { %1340 = vmatprep.subr.bf16.mxu1 %v1455_v4 }
 0x87e   :  { %1342 = vmatpush3.bf16.msra.mxu1 %v1530_v14 }
 0x87f   :  { %1349 = vmatprep.subr.bf16.mxu1 %v1455_v4 }
 0x94c   :  { %v563_v34 = vpop.f32.mrb[4].mxu1 }
 0x94d   :  { %v564_v35 = vadd.f32 %v563_v34, %v150_v33  ;;  %v1243_v36 = vpop.f32.mrb[5].mxu1 }
 0x94f   :  { %v1112_v37 = vmul.f32 -1.442695, %v564_v35 }
 0x951   :  { %1391 = vpow2.f32 %v1112_v37 }
 0x952   :  { %1393 = vtanh.f32 %v564_v35 }
 0x95b   :  { %v1392_v38 = vpop.eup %1391 }
 0x95c   :  { %v571_v39 = vadd.f32 1.0, %v1392_v38  ;;  %v1394_v40 = vpop.eup %1393 }
 0x95e   :  { %1395 = vrcp.f32 %v571_v39 }
 0x968   :  { %v1396_v41 = vpop.eup %1395 }
 0x969   :  { %v574_v42 = vsel %vm1557_vm4, %v1394_v40, %v1396_v41 }
 0x96a   :  { %577 = vrot.lane.b32.xlu0 %v574_v42, %s1458_s3  ;;  %v575_v45 = vmul.f32 %v574_v42, %v484_v27 }
 0x9dc   :  { %v578_v43 = vpop.permute.xlu0 %577 }
 0x9dd   :  { %v580_v44 = vmul.f32 %v578_v43, %v574_v42 }
 0x9df   :  { %582 = vrot.lane.b32.xlu1 %v580_v44, %s1459_s17 }
 0xa51   :  { %v583_v46 = vpop.permute.xlu1 %582 }
 0xa52   :  { %v585_v47 = vadd.f32 %v583_v46, %v575_v45 }
 0xa54   :  { %1397 = vtanh.f32 %v585_v47 }
 0xa5e   :  { %v1398_v48 = vpop.eup %1397 }
 0xa5f   :  { %588 = vrot.lane.b32.xlu0 %v1398_v48, %s1458_s3 }
 0xad1   :  { %v589_v49 = vpop.permute.xlu0 %588 }
 0xad2   :  { %v591_v50 = vmul.f32 %v589_v49, %v574_v42  ;;  %v170_v49 = vadd.f32 %v1611_v6, %v1554_v16 }
 0xad4   :  { %594 = vrot.lane.b32.xlu1 %v591_v50, %s1459_s17 }
 0xb46   :  { %v595_v51 = vpop.permute.xlu1 %594 }
 0xb47   :  { %1253 = vmatmul.mubr.msk.f32.vlgmr.msra.gmra.mrb[10].mxu0 %vm43_vm0, %v595_v51 }
 0xb48   :  { %1345 = vmatpush3.bf16.msra.mxu0 %v1515_v8  ;;  %1274 = vmatprep.mubr.msk.f32.mxu0 %vm1456_vm1, %v1457_v13 }
 0xb49   :  { %1346 = vmatprep.subr.bf16.mxu0 %v1455_v4 }
 0xb4c   :  { %1348 = vmatpush3.bf16.msra.mxu0 %v1530_v14 }
 0xb4d   :  { %1355 = vmatprep.subr.bf16.mxu0 %v1455_v4 }
 0xc1a   :  { %v664_v53 = vpop.f32.mrb[10].mxu0 }
 0xc1b   :  { %v665_v54 = vadd.f32 %v664_v53, %v155_v52  ;;  %v1254_v55 = vpop.f32.mrb[11].mxu0 }
 0xc1d   :  { %v1114_v56 = vmul.f32 -1.442695, %v665_v54 }
 0xc1f   :  { %1399 = vpow2.f32 %v1114_v56 }
 0xc20   :  { %1401 = vtanh.f32 %v665_v54 }
 0xc29   :  { %v1400_v57 = vpop.eup %1399 }
 0xc2a   :  { %v672_v58 = vadd.f32 1.0, %v1400_v57  ;;  %v1402_v59 = vpop.eup %1401 }
 0xc2c   :  { %1403 = vrcp.f32 %v672_v58 }
 0xc36   :  { %v1404_v60 = vpop.eup %1403 }
 0xc37   :  { %v675_v61 = vsel %vm1557_vm4, %v1402_v59, %v1404_v60 }
 0xc38   :  { %678 = vrot.lane.b32.xlu0 %v675_v61, %s1458_s3  ;;  %v676_v0 = vmul.f32 %v675_v61, %v585_v47 }
 0xcaa   :  { %v679_v62 = vpop.permute.xlu0 %678 }
 0xcab   :  { %v681_v63 = vmul.f32 %v679_v62, %v675_v61  ;;  %v996_v62 = vld [vmem:[%s1725_s4] sm:$0xff] }
 0xcad   :  { %683 = vrot.lane.b32.xlu1 %v681_v63, %s1459_s17  ;;  %v997_v63 = vld [vmem:[%s1725_s4 + $0x8] sm:$0xff] }
 0xd1f   :  { %v684_v1 = vpop.permute.xlu1 %683 }
 0xd20   :  { %v686_v2 = vadd.f32 %v684_v1, %v676_v0  ;;  %v1356_v0 = vpack.c.bf16 %v997_v63, %v996_v62  ;;  %v999_v1 = vld [vmem:[%s1725_s4 + $0x18] sm:$0xff]  ;;  %s1460_s4 = smov [#allocation3]  }
 0xd21   :  { %s1089_s1 = sshll.u32 %s1460_s4, 4  ;;  %s1090_s1 = int_to_ptr.vmem [resolvable:$true] %s1089_s1 }
 0xd22   :  { %1405 = vtanh.f32 %v686_v2  ;;  %s1431_s2 = scalar_lea.vmem %s1090_s1, 128  ;;  %p1436_p1 = scmp.lt.s32.totalorder %s1090_s1, %s1090_s1 }
 0xd23   :  { %p1432_p0 = scmp.ne.s32.totalorder %s1090_s1, %s1431_s2  ;;  %p1437_p2 = scmp.lt.s32.totalorder %s1431_s2, %s1431_s2 }
 0xd25   :  { %p1438_p3 = por %p1437_p2, %p1436_p1 }
 0xd27   :  { %p1439_p4 = pnand %p1438_p3, %p1432_p0 }
 0xd2c   :  { %v1406_v5 = vpop.eup %1405 }
 0xd2d   :  { %689 = vrot.lane.b32.xlu0 %v1406_v5, %s1458_s3 }
 0xd9f   :  { %v690_v9 = vpop.permute.xlu0 %689 }
 0xda0   :  { %v692_v10 = vmul.f32 %v690_v9, %v675_v61 }
 0xda2   :  { %695 = vrot.lane.b32.xlu1 %v692_v10, %s1459_s17 }
 0xe14   :  { %v696_v11 = vpop.permute.xlu1 %695 }
 0xe15   :  { %1264 = vmatmul.mubr.msk.f32.vlgmr.msra.gmra.mrb[6].mxu1 %vm43_vm0, %v696_v11 }
 0xe16   :  { %1351 = vmatpush3.bf16.msra.mxu1 %v1515_v8  ;;  %1285 = vmatprep.mubr.msk.f32.mxu1 %vm1456_vm1, %v1457_v13 }
 0xe17   :  { %1352 = vmatprep.subr.bf16.mxu1 %v1455_v4 }
 0xe1a   :  { %1354 = vmatpush3.bf16.msra.mxu1 %v1530_v14 }
 0xee8   :  { %v765_v15 = vpop.f32.mrb[6].mxu1 }
 0xee9   :  { %v766_v17 = vadd.f32 %v765_v15, %v160_v12  ;;  %v1265_v18 = vpop.f32.mrb[7].mxu1  ;;  %v1121_v12 = vld [vmem:[%s1726_s5] ss:$0 sm:$0xff] }
 0xeeb   :  { %v1116_v19 = vmul.f32 -1.442695, %v766_v17 }
 0xeed   :  { %1407 = vpow2.f32 %v1116_v19 }
 0xeee   :  { %1409 = vtanh.f32 %v766_v17 }
 0xef7   :  { %v1408_v20 = vpop.eup %1407 }
 0xef8   :  { %v773_v21 = vadd.f32 1.0, %v1408_v20  ;;  %v1410_v8 = vpop.eup %1409 }
 0xefa   :  { %1411 = vrcp.f32 %v773_v21 }
 0xf04   :  { %v1412_v22 = vpop.eup %1411 }
 0xf05   :  { %v776_v23 = vsel %vm1557_vm4, %v1410_v8, %v1412_v22 }
 0xf06   :  { %779 = vrot.lane.b32.xlu0 %v776_v23, %s1458_s3  ;;  %v777_v3 = vmul.f32 %v776_v23, %v686_v2  ;;  %v1359_v2 = vpack.c.bf16 %v999_v1, %v998_v28 }
 0xf78   :  { %v780_v14 = vpop.permute.xlu0 %779 }
 0xf79   :  { %v782_v24 = vmul.f32 %v780_v14, %v776_v23 }
 0xf7b   :  { %784 = vrot.lane.b32.xlu1 %v782_v24, %s1459_s17 }
 0xfed   :  { %v785_v25 = vpop.permute.xlu1 %784 }
 0xfee   :  { %v787_v26 = vadd.f32 %v785_v25, %v777_v3 }
 0xff0   :  { %1413 = vtanh.f32 %v787_v26 }
 0xffa   :  { %v1414_v27 = vpop.eup %1413 }
 0xffb   :  { %790 = vrot.lane.b32.xlu0 %v1414_v27, %s1458_s3 }
0x106d   :  { %v791_v29 = vpop.permute.xlu0 %790 }
0x106e   :  { %v793_v30 = vmul.f32 %v791_v29, %v776_v23 }
0x1070   :  { %796 = vrot.lane.b32.xlu1 %v793_v30, %s1459_s17 }
0x10e2   :  { %v797_v31 = vpop.permute.xlu1 %796 }
0x10e3   :  { %1275 = vmatmul.mubr.msk.f32.vlgmr.msra.gmra.mrb[12].mxu0 %vm43_vm0, %v797_v31 }
0x10e4   :  { %1296 = vmatprep.mubr.msk.f32.mxu0 %vm1456_vm1, %v1457_v13  ;;  %1357 = vmatpush3.bf16.msra.mxu0 %v1356_v0 }
0x10e5   :  { %1358 = vmatprep.subr.bf16.mxu0 %v1455_v4 }
0x10e8   :  { %1360 = vmatpush3.bf16.msra.mxu0 %v1359_v2 }
0x11b6   :  { %v866_v33 = vpop.f32.mrb[12].mxu0 }
0x11b7   :  { %v867_v34 = vadd.f32 %v866_v33, %v165_v32  ;;  %v1276_v35 = vpop.f32.mrb[13].mxu0 }
0x11b9   :  { %v1118_v36 = vmul.f32 -1.442695, %v867_v34 }
0x11bb   :  { %1415 = vpow2.f32 %v1118_v36 }
0x11bc   :  { %1417 = vtanh.f32 %v867_v34 }
0x11c5   :  { %v1416_v37 = vpop.eup %1415 }
0x11c6   :  { %v874_v38 = vadd.f32 1.0, %v1416_v37  ;;  %v1418_v39 = vpop.eup %1417 }
0x11c8   :  { %1419 = vrcp.f32 %v874_v38 }
0x11d2   :  { %v1420_v40 = vpop.eup %1419 }
0x11d3   :  { %v877_v41 = vsel %vm1557_vm4, %v1418_v39, %v1420_v40 }
0x11d4   :  { %880 = vrot.lane.b32.xlu0 %v877_v41, %s1458_s3  ;;  %v878_v7 = vmul.f32 %v877_v41, %v787_v26 }
0x1246   :  { %v881_v13 = vpop.permute.xlu0 %880 }
0x1247   :  { %v883_v42 = vmul.f32 %v881_v13, %v877_v41 }
0x1249   :  { %885 = vrot.lane.b32.xlu1 %v883_v42, %s1459_s17 }
0x12bb   :  { %v886_v43 = vpop.permute.xlu1 %885 }
0x12bc   :  { %v888_v44 = vadd.f32 %v886_v43, %v878_v7 }
0x12be   :  { %1421 = vtanh.f32 %v888_v44 }
0x12c8   :  { %v1422_v45 = vpop.eup %1421 }
0x12c9   :  { %891 = vrot.lane.b32.xlu0 %v1422_v45, %s1458_s3 }
0x133b   :  { %v892_v46 = vpop.permute.xlu0 %891 }
0x133c   :  { %v894_v47 = vmul.f32 %v892_v46, %v877_v41 }
0x133e   :  { %897 = vrot.lane.b32.xlu1 %v894_v47, %s1459_s17 }
0x13b0   :  { %v898_v48 = vpop.permute.xlu1 %897 }
0x13b1   :  { %1286 = vmatmul.mubr.msk.f32.vlgmr.msra.gmra.mrb[8].mxu1 %vm43_vm0, %v898_v48 }
0x1484   :  { %v967_v50 = vpop.f32.mrb[8].mxu1 }
0x1485   :  { %v968_v51 = vadd.f32 %v967_v50, %v170_v49  ;;  %v1287_v52 = vpop.f32.mrb[9].mxu1 }
0x1487   :  { %v1120_v53 = vmul.f32 -1.442695, %v968_v51 }
0x1489   :  { %1423 = vpow2.f32 %v1120_v53 }
0x148a   :  { %1425 = vtanh.f32 %v968_v51 }
0x1493   :  { %v1424_v54 = vpop.eup %1423 }
0x1494   :  { %v975_v55 = vadd.f32 1.0, %v1424_v54  ;;  %v1426_v56 = vpop.eup %1425 }
0x1496   :  { %1427 = vrcp.f32 %v975_v55 }
0x14a0   :  { %v1428_v57 = vpop.eup %1427 }
0x14a1   :  { %v978_v58 = vsel %vm1557_vm4, %v1426_v56, %v1428_v57 }
0x14a2   :  { %981 = vrot.lane.b32.xlu0 %v978_v58, %s1458_s3  ;;  %v979_v16 = vmul.f32 %v978_v58, %v888_v44 }
0x1514   :  { %v982_v59 = vpop.permute.xlu0 %981 }
0x1515   :  { %v984_v60 = vmul.f32 %v982_v59, %v978_v58 }
0x1517   :  { %986 = vrot.lane.b32.xlu1 %v984_v60, %s1459_s17 }
0x1589   :  { %v987_v6 = vpop.permute.xlu1 %986 }
0x158a   :  { %v989_v61 = vadd.f32 %v987_v6, %v979_v16 }
0x158c   :  { %1429 = vtanh.f32 %v989_v61 }
0x1596   :  { %v1430_v5 = vpop.eup %1429 }
0x1597   :  { %992 = vrot.lane.b32.xlu0 %v1430_v5, %s1458_s3 }
0x1609   :  { %v993_v9 = vpop.permute.xlu0 %992 }
0x160a   :  { %v995_v10 = vmul.f32 %v993_v9, %v978_v58 }
0x160c   :  { %1008 = vrot.lane.b32.xlu1 %v995_v10, %s1459_s17 }
0x167e   :  { %v1009_v11 = vpop.permute.xlu1 %1008 }
0x167f   :  { %1297 = vmatmul.mubr.msk.f32.vlgmr.msra.gmra.mrb[14].mxu0 %vm43_vm0, %v1009_v11 }
0x1752   :  { %v1078_v15 = vpop.f32.mrb[14].mxu0 }
0x1753   :  { %v1079_v17 = vadd.f32 %v1121_v12, %v1078_v15  ;;  %v1298_v4 = vpop.f32.mrb[15].mxu0 }
0x1755   :  { %1082 = vst [vmem:[#allocation3] sm:$0xff] %v1079_v17 }
0x1756   :  { %1442 = shalt.err (!%p1439_p4)
}
0x1757   :  { %s1443_s3 = scalar_lea.hbm %s1727_s6, 128 }
0x1758   :  { %p1444_p5 = scmp.ne.s32.totalorder %s1727_s6, %s1443_s3  ;;  %p1447_p6 = scmp.lt.u32.totalorder %s1443_s3, %s1727_s6 }
0x175a   :  { %p1449_p7 = pnand %p1447_p6, %p1444_p5 }
0x175c   :  { %1452 = shalt.err (!%p1449_p7)
}
0x175d   :  { %1092 = dma.vmem_to_hbm [thread:$0]  %s1090_s1, 128, %s1727_s6, [#allocation4]  }
0x175e   :  { %1453 = dma.done.wait [#allocation4], 128  }
0x175f   :  { %1454 = vsyncadd [#allocation4], 4294967168 }
0x1760   :  { %1096 = vsyncpa [#allocation4], 1 }

</bundles_post_ra>
